<compile_context>
chip_gen: v7x
topology: tpu7x:2x2x1
jax: 0.10.0
libtpu: 0.0.40
codegen_flags: <defaults>
</compile_context>

<pallas_src>
import jax
import jax.numpy as jnp
from jax.experimental import pallas as pl
from jax.experimental.pallas import tpu as pltpu

VOCAB_SIZE = 31650
EMBED_DIM = 64
NUM_CLASS = 2


def _text_cls_kernel(tokens_ref, emb_hbm, pool_ref, w_ref, b_ref, out_ref,
                     gather_ref, sem_ref):
    """tokens_ref: SMEM (B*S,) int32   (pre-clamped, flattened token ids)
       emb_hbm:    HBM  (V, D) f32     (raw ref, memory_space=pl.ANY)
       pool_ref:   VMEM (B, B*S) f32   (block-diagonal 1/S mean-pooling matrix)
       w_ref:      VMEM (D, C) f32     (torch Linear weight transposed)
       b_ref:      VMEM (1, C) f32
       out_ref:    VMEM (B, C) f32
       gather_ref: VMEM (B*S, D) f32   scratch (gathered embedding rows, ~32 KiB)
       sem_ref:    single shared DMA semaphore, shape ()
    """
    N, D = gather_ref.shape
    B = out_ref.shape[0]
    S = N // B

    # Phase 1: issue all N row-gather DMAs (HBM -> VMEM scratch). Every copy
    # signals the single shared semaphore; nothing blocks here.
    @pl.loop(0, B)
    def _issue(b):
        base = b * S
        for s in range(S):                 # inner loop unrolled: S starts per bag
            t = base + s
            idx = tokens_ref[t]            # already clamped in the wrapper
            pltpu.make_async_copy(
                emb_hbm.at[pl.ds(idx, 1), :],
                gather_ref.at[pl.ds(t, 1), :],
                sem_ref,
            ).start()

    # Phase 2: ONE aggregate wait. The dst is the whole gather slab, so the wait
    # amount (N * D * 4 bytes) exactly equals the sum of all started row copies.
    pltpu.make_async_copy(
        emb_hbm.at[pl.ds(0, N), :],
        gather_ref,
        sem_ref,
    ).wait()

    # Phase 3: mean-pool on the MXU (1/S folded into pool matrix) + Linear.
    emb = gather_ref[...]                                        # (N, D)
    mean = jnp.dot(pool_ref[...], emb,
                   preferred_element_type=jnp.float32)           # (B, D)
    logits = jnp.dot(mean, w_ref[...],
                     preferred_element_type=jnp.float32)         # (B, C)
    out_ref[...] = logits + b_ref[...]


@jax.jit
def text_classification_forward(tokens, emb_table, fc_w_t, fc_b):
    B, S = tokens.shape
    V, D = emb_table.shape
    C = fc_w_t.shape[1]
    N = B * S

    # Hoisted out of the kernel: one vectorized clamp + flatten of the token ids.
    tok_flat = jnp.clip(tokens, 0, V - 1).astype(jnp.int32).reshape(N)

    # Block-diagonal mean-pooling matrix: row b has 1/S at columns [b*S, (b+1)*S).
    pool = jnp.repeat(jnp.eye(B, dtype=jnp.float32), S, axis=1) * jnp.float32(1.0 / S)

    return pl.pallas_call(
        _text_cls_kernel,
        out_shape=jax.ShapeDtypeStruct((B, C), jnp.float32),
        in_specs=[
            pl.BlockSpec(memory_space=pltpu.MemorySpace.SMEM),   # flat token ids
            pl.BlockSpec(memory_space=pl.ANY),                   # embedding table stays in HBM
            pl.BlockSpec(memory_space=pltpu.MemorySpace.VMEM),   # pooling matrix (B, N)
            pl.BlockSpec(memory_space=pltpu.MemorySpace.VMEM),   # fc weight (D, C)
            pl.BlockSpec(memory_space=pltpu.MemorySpace.VMEM),   # fc bias (1, C)
        ],
        out_specs=pl.BlockSpec(memory_space=pltpu.MemorySpace.VMEM),
        scratch_shapes=[
            pltpu.VMEM((N, D), jnp.float32),   # gathered rows (~32 KiB)
            pltpu.SemaphoreType.DMA(()),       # single shared DMA semaphore
        ],
    )(tok_flat, emb_table, pool, fc_w_t, fc_b.reshape(1, C))


if __name__ == "__main__":
    key = jax.random.PRNGKey(0)
    k_tok, k_emb, k_w, k_b = jax.random.split(key, 4)

    B, S = 8, 16  # small batch of bags, each with S tokens
    # (Perf note: batching many more bags per call is the biggest end-to-end lever;
    #  the gather scratch is only 256 B/token, so B=1024, S=16 is still ~4 MiB.)

    # Deterministic synthetic parameters (shapes match the torch module).
    emb_table = jax.random.normal(k_emb, (VOCAB_SIZE, EMBED_DIM), jnp.float32)
    fc_w = jax.random.normal(k_w, (NUM_CLASS, EMBED_DIM), jnp.float32) * 0.1  # torch layout (C, D)
    fc_b = jax.random.normal(k_b, (NUM_CLASS,), jnp.float32) * 0.1
    fc_w_t = fc_w.T  # (D, C) for the kernel

    tokens = jax.random.randint(k_tok, (B, S), 0, VOCAB_SIZE, jnp.int32)

    logits = text_classification_forward(tokens, emb_table, fc_w_t, fc_b)
    jax.block_until_ready(logits)

    # Pure-JAX reference: EmbeddingBag(mean) + Linear.
    ref = emb_table[tokens].mean(axis=1) @ fc_w_t + fc_b
    assert logits.shape == (B, NUM_CLASS)
    # Slightly looser than bit-exact: the mean-pool now runs on the MXU as an f32
    # matmul; any gather/pool/linear bug would produce O(0.1+) errors, not 1e-3.
    assert jnp.allclose(logits, ref, atol=1e-3, rtol=1e-3), "mismatch vs reference"

    print("KERNEL_OK")
</pallas_src>

<mosaic_0001>
module attributes {stable_mosaic.version = 11 : i64} {
  func.func @_text_cls_kernel(%arg0: memref<128xi32, #tpu.memory_space<smem>>, %arg1: memref<31650x64xf32, #tpu.memory_space<any>>, %arg2: memref<8x128xf32, #tpu.memory_space<vmem>>, %arg3: memref<64x2xf32, #tpu.memory_space<vmem>>, %arg4: memref<1x2xf32, #tpu.memory_space<vmem>>, %arg5: memref<8x2xf32, #tpu.memory_space<vmem>>, %arg6: memref<128x64xf32, #tpu.memory_space<vmem>>, %arg7: memref<!tpu.dma_semaphore, #tpu.memory_space<semaphore_mem>>) attributes {dimension_semantics = [], scalar_prefetch = 0 : i64, scratch_operands = 2 : i64, tpu.core_type = #tpu.core_type<tc>} {
    %c0_i32 = arith.constant 0 : i32
    %c8_i32 = arith.constant 8 : i32
    %0 = arith.addi %c0_i32, %c8_i32 : i32
    %c1_i32 = arith.constant 1 : i32
    scf.for %arg8 = %c0_i32 to %0 step %c1_i32  : i32 {
      %c1_i32_13 = arith.constant 1 : i32
      %11 = arith.muli %arg8, %c1_i32_13 : i32
      %c0_i32_14 = arith.constant 0 : i32
      %12 = arith.addi %c0_i32_14, %11 : i32
      %c16_i32 = arith.constant 16 : i32
      %13 = arith.muli %12, %c16_i32 : i32
      %c0_i32_15 = arith.constant 0 : i32
      %14 = arith.addi %13, %c0_i32_15 : i32
      %15 = arith.index_cast %14 : i32 to index
      %16 = memref.load %arg0[%15] : memref<128xi32, #tpu.memory_space<smem>>
      %c0_i32_16 = arith.constant 0 : i32
      %17 = tpu.memref_slice %arg1[%16, %c0_i32_16] : memref<31650x64xf32, #tpu.memory_space<any>> -> memref<1x64xf32, #tpu.memory_space<any>>
      %c0_i32_17 = arith.constant 0 : i32
      %18 = tpu.memref_slice %arg6[%14, %c0_i32_17] : memref<128x64xf32, #tpu.memory_space<vmem>> -> memref<1x64xf32, #tpu.memory_space<vmem>>
      tpu.enqueue_dma source(%17 : memref<1x64xf32, #tpu.memory_space<any>>) target(%18 : memref<1x64xf32, #tpu.memory_space<vmem>>) target_semaphore(%arg7 : memref<!tpu.dma_semaphore, #tpu.memory_space<semaphore_mem>>)
      %c1_i32_18 = arith.constant 1 : i32
      %19 = arith.addi %13, %c1_i32_18 : i32
      %20 = arith.index_cast %19 : i32 to index
      %21 = memref.load %arg0[%20] : memref<128xi32, #tpu.memory_space<smem>>
      %c0_i32_19 = arith.constant 0 : i32
      %22 = tpu.memref_slice %arg1[%21, %c0_i32_19] : memref<31650x64xf32, #tpu.memory_space<any>> -> memref<1x64xf32, #tpu.memory_space<any>>
      %c0_i32_20 = arith.constant 0 : i32
      %23 = tpu.memref_slice %arg6[%19, %c0_i32_20] : memref<128x64xf32, #tpu.memory_space<vmem>> -> memref<1x64xf32, #tpu.memory_space<vmem>>
      tpu.enqueue_dma source(%22 : memref<1x64xf32, #tpu.memory_space<any>>) target(%23 : memref<1x64xf32, #tpu.memory_space<vmem>>) target_semaphore(%arg7 : memref<!tpu.dma_semaphore, #tpu.memory_space<semaphore_mem>>)
      %c2_i32 = arith.constant 2 : i32
      %24 = arith.addi %13, %c2_i32 : i32
      %25 = arith.index_cast %24 : i32 to index
      %26 = memref.load %arg0[%25] : memref<128xi32, #tpu.memory_space<smem>>
      %c0_i32_21 = arith.constant 0 : i32
      %27 = tpu.memref_slice %arg1[%26, %c0_i32_21] : memref<31650x64xf32, #tpu.memory_space<any>> -> memref<1x64xf32, #tpu.memory_space<any>>
      %c0_i32_22 = arith.constant 0 : i32
      %28 = tpu.memref_slice %arg6[%24, %c0_i32_22] : memref<128x64xf32, #tpu.memory_space<vmem>> -> memref<1x64xf32, #tpu.memory_space<vmem>>
      tpu.enqueue_dma source(%27 : memref<1x64xf32, #tpu.memory_space<any>>) target(%28 : memref<1x64xf32, #tpu.memory_space<vmem>>) target_semaphore(%arg7 : memref<!tpu.dma_semaphore, #tpu.memory_space<semaphore_mem>>)
      %c3_i32 = arith.constant 3 : i32
      %29 = arith.addi %13, %c3_i32 : i32
      %30 = arith.index_cast %29 : i32 to index
      %31 = memref.load %arg0[%30] : memref<128xi32, #tpu.memory_space<smem>>
      %c0_i32_23 = arith.constant 0 : i32
      %32 = tpu.memref_slice %arg1[%31, %c0_i32_23] : memref<31650x64xf32, #tpu.memory_space<any>> -> memref<1x64xf32, #tpu.memory_space<any>>
      %c0_i32_24 = arith.constant 0 : i32
      %33 = tpu.memref_slice %arg6[%29, %c0_i32_24] : memref<128x64xf32, #tpu.memory_space<vmem>> -> memref<1x64xf32, #tpu.memory_space<vmem>>
      tpu.enqueue_dma source(%32 : memref<1x64xf32, #tpu.memory_space<any>>) target(%33 : memref<1x64xf32, #tpu.memory_space<vmem>>) target_semaphore(%arg7 : memref<!tpu.dma_semaphore, #tpu.memory_space<semaphore_mem>>)
      %c4_i32 = arith.constant 4 : i32
      %34 = arith.addi %13, %c4_i32 : i32
      %35 = arith.index_cast %34 : i32 to index
      %36 = memref.load %arg0[%35] : memref<128xi32, #tpu.memory_space<smem>>
      %c0_i32_25 = arith.constant 0 : i32
      %37 = tpu.memref_slice %arg1[%36, %c0_i32_25] : memref<31650x64xf32, #tpu.memory_space<any>> -> memref<1x64xf32, #tpu.memory_space<any>>
      %c0_i32_26 = arith.constant 0 : i32
      %38 = tpu.memref_slice %arg6[%34, %c0_i32_26] : memref<128x64xf32, #tpu.memory_space<vmem>> -> memref<1x64xf32, #tpu.memory_space<vmem>>
      tpu.enqueue_dma source(%37 : memref<1x64xf32, #tpu.memory_space<any>>) target(%38 : memref<1x64xf32, #tpu.memory_space<vmem>>) target_semaphore(%arg7 : memref<!tpu.dma_semaphore, #tpu.memory_space<semaphore_mem>>)
      %c5_i32 = arith.constant 5 : i32
      %39 = arith.addi %13, %c5_i32 : i32
      %40 = arith.index_cast %39 : i32 to index
      %41 = memref.load %arg0[%40] : memref<128xi32, #tpu.memory_space<smem>>
      %c0_i32_27 = arith.constant 0 : i32
      %42 = tpu.memref_slice %arg1[%41, %c0_i32_27] : memref<31650x64xf32, #tpu.memory_space<any>> -> memref<1x64xf32, #tpu.memory_space<any>>
      %c0_i32_28 = arith.constant 0 : i32
      %43 = tpu.memref_slice %arg6[%39, %c0_i32_28] : memref<128x64xf32, #tpu.memory_space<vmem>> -> memref<1x64xf32, #tpu.memory_space<vmem>>
      tpu.enqueue_dma source(%42 : memref<1x64xf32, #tpu.memory_space<any>>) target(%43 : memref<1x64xf32, #tpu.memory_space<vmem>>) target_semaphore(%arg7 : memref<!tpu.dma_semaphore, #tpu.memory_space<semaphore_mem>>)
      %c6_i32 = arith.constant 6 : i32
      %44 = arith.addi %13, %c6_i32 : i32
      %45 = arith.index_cast %44 : i32 to index
      %46 = memref.load %arg0[%45] : memref<128xi32, #tpu.memory_space<smem>>
      %c0_i32_29 = arith.constant 0 : i32
      %47 = tpu.memref_slice %arg1[%46, %c0_i32_29] : memref<31650x64xf32, #tpu.memory_space<any>> -> memref<1x64xf32, #tpu.memory_space<any>>
      %c0_i32_30 = arith.constant 0 : i32
      %48 = tpu.memref_slice %arg6[%44, %c0_i32_30] : memref<128x64xf32, #tpu.memory_space<vmem>> -> memref<1x64xf32, #tpu.memory_space<vmem>>
      tpu.enqueue_dma source(%47 : memref<1x64xf32, #tpu.memory_space<any>>) target(%48 : memref<1x64xf32, #tpu.memory_space<vmem>>) target_semaphore(%arg7 : memref<!tpu.dma_semaphore, #tpu.memory_space<semaphore_mem>>)
      %c7_i32 = arith.constant 7 : i32
      %49 = arith.addi %13, %c7_i32 : i32
      %50 = arith.index_cast %49 : i32 to index
      %51 = memref.load %arg0[%50] : memref<128xi32, #tpu.memory_space<smem>>
      %c0_i32_31 = arith.constant 0 : i32
      %52 = tpu.memref_slice %arg1[%51, %c0_i32_31] : memref<31650x64xf32, #tpu.memory_space<any>> -> memref<1x64xf32, #tpu.memory_space<any>>
      %c0_i32_32 = arith.constant 0 : i32
      %53 = tpu.memref_slice %arg6[%49, %c0_i32_32] : memref<128x64xf32, #tpu.memory_space<vmem>> -> memref<1x64xf32, #tpu.memory_space<vmem>>
      tpu.enqueue_dma source(%52 : memref<1x64xf32, #tpu.memory_space<any>>) target(%53 : memref<1x64xf32, #tpu.memory_space<vmem>>) target_semaphore(%arg7 : memref<!tpu.dma_semaphore, #tpu.memory_space<semaphore_mem>>)
      %c8_i32_33 = arith.constant 8 : i32
      %54 = arith.addi %13, %c8_i32_33 : i32
      %55 = arith.index_cast %54 : i32 to index
      %56 = memref.load %arg0[%55] : memref<128xi32, #tpu.memory_space<smem>>
      %c0_i32_34 = arith.constant 0 : i32
      %57 = tpu.memref_slice %arg1[%56, %c0_i32_34] : memref<31650x64xf32, #tpu.memory_space<any>> -> memref<1x64xf32, #tpu.memory_space<any>>
      %c0_i32_35 = arith.constant 0 : i32
      %58 = tpu.memref_slice %arg6[%54, %c0_i32_35] : memref<128x64xf32, #tpu.memory_space<vmem>> -> memref<1x64xf32, #tpu.memory_space<vmem>>
      tpu.enqueue_dma source(%57 : memref<1x64xf32, #tpu.memory_space<any>>) target(%58 : memref<1x64xf32, #tpu.memory_space<vmem>>) target_semaphore(%arg7 : memref<!tpu.dma_semaphore, #tpu.memory_space<semaphore_mem>>)
      %c9_i32 = arith.constant 9 : i32
      %59 = arith.addi %13, %c9_i32 : i32
      %60 = arith.index_cast %59 : i32 to index
      %61 = memref.load %arg0[%60] : memref<128xi32, #tpu.memory_space<smem>>
      %c0_i32_36 = arith.constant 0 : i32
      %62 = tpu.memref_slice %arg1[%61, %c0_i32_36] : memref<31650x64xf32, #tpu.memory_space<any>> -> memref<1x64xf32, #tpu.memory_space<any>>
      %c0_i32_37 = arith.constant 0 : i32
      %63 = tpu.memref_slice %arg6[%59, %c0_i32_37] : memref<128x64xf32, #tpu.memory_space<vmem>> -> memref<1x64xf32, #tpu.memory_space<vmem>>
      tpu.enqueue_dma source(%62 : memref<1x64xf32, #tpu.memory_space<any>>) target(%63 : memref<1x64xf32, #tpu.memory_space<vmem>>) target_semaphore(%arg7 : memref<!tpu.dma_semaphore, #tpu.memory_space<semaphore_mem>>)
      %c10_i32 = arith.constant 10 : i32
      %64 = arith.addi %13, %c10_i32 : i32
      %65 = arith.index_cast %64 : i32 to index
      %66 = memref.load %arg0[%65] : memref<128xi32, #tpu.memory_space<smem>>
      %c0_i32_38 = arith.constant 0 : i32
      %67 = tpu.memref_slice %arg1[%66, %c0_i32_38] : memref<31650x64xf32, #tpu.memory_space<any>> -> memref<1x64xf32, #tpu.memory_space<any>>
      %c0_i32_39 = arith.constant 0 : i32
      %68 = tpu.memref_slice %arg6[%64, %c0_i32_39] : memref<128x64xf32, #tpu.memory_space<vmem>> -> memref<1x64xf32, #tpu.memory_space<vmem>>
      tpu.enqueue_dma source(%67 : memref<1x64xf32, #tpu.memory_space<any>>) target(%68 : memref<1x64xf32, #tpu.memory_space<vmem>>) target_semaphore(%arg7 : memref<!tpu.dma_semaphore, #tpu.memory_space<semaphore_mem>>)
      %c11_i32 = arith.constant 11 : i32
      %69 = arith.addi %13, %c11_i32 : i32
      %70 = arith.index_cast %69 : i32 to index
      %71 = memref.load %arg0[%70] : memref<128xi32, #tpu.memory_space<smem>>
      %c0_i32_40 = arith.constant 0 : i32
      %72 = tpu.memref_slice %arg1[%71, %c0_i32_40] : memref<31650x64xf32, #tpu.memory_space<any>> -> memref<1x64xf32, #tpu.memory_space<any>>
      %c0_i32_41 = arith.constant 0 : i32
      %73 = tpu.memref_slice %arg6[%69, %c0_i32_41] : memref<128x64xf32, #tpu.memory_space<vmem>> -> memref<1x64xf32, #tpu.memory_space<vmem>>
      tpu.enqueue_dma source(%72 : memref<1x64xf32, #tpu.memory_space<any>>) target(%73 : memref<1x64xf32, #tpu.memory_space<vmem>>) target_semaphore(%arg7 : memref<!tpu.dma_semaphore, #tpu.memory_space<semaphore_mem>>)
      %c12_i32 = arith.constant 12 : i32
      %74 = arith.addi %13, %c12_i32 : i32
      %75 = arith.index_cast %74 : i32 to index
      %76 = memref.load %arg0[%75] : memref<128xi32, #tpu.memory_space<smem>>
      %c0_i32_42 = arith.constant 0 : i32
      %77 = tpu.memref_slice %arg1[%76, %c0_i32_42] : memref<31650x64xf32, #tpu.memory_space<any>> -> memref<1x64xf32, #tpu.memory_space<any>>
      %c0_i32_43 = arith.constant 0 : i32
      %78 = tpu.memref_slice %arg6[%74, %c0_i32_43] : memref<128x64xf32, #tpu.memory_space<vmem>> -> memref<1x64xf32, #tpu.memory_space<vmem>>
      tpu.enqueue_dma source(%77 : memref<1x64xf32, #tpu.memory_space<any>>) target(%78 : memref<1x64xf32, #tpu.memory_space<vmem>>) target_semaphore(%arg7 : memref<!tpu.dma_semaphore, #tpu.memory_space<semaphore_mem>>)
      %c13_i32 = arith.constant 13 : i32
      %79 = arith.addi %13, %c13_i32 : i32
      %80 = arith.index_cast %79 : i32 to index
      %81 = memref.load %arg0[%80] : memref<128xi32, #tpu.memory_space<smem>>
      %c0_i32_44 = arith.constant 0 : i32
      %82 = tpu.memref_slice %arg1[%81, %c0_i32_44] : memref<31650x64xf32, #tpu.memory_space<any>> -> memref<1x64xf32, #tpu.memory_space<any>>
      %c0_i32_45 = arith.constant 0 : i32
      %83 = tpu.memref_slice %arg6[%79, %c0_i32_45] : memref<128x64xf32, #tpu.memory_space<vmem>> -> memref<1x64xf32, #tpu.memory_space<vmem>>
      tpu.enqueue_dma source(%82 : memref<1x64xf32, #tpu.memory_space<any>>) target(%83 : memref<1x64xf32, #tpu.memory_space<vmem>>) target_semaphore(%arg7 : memref<!tpu.dma_semaphore, #tpu.memory_space<semaphore_mem>>)
      %c14_i32 = arith.constant 14 : i32
      %84 = arith.addi %13, %c14_i32 : i32
      %85 = arith.index_cast %84 : i32 to index
      %86 = memref.load %arg0[%85] : memref<128xi32, #tpu.memory_space<smem>>
      %c0_i32_46 = arith.constant 0 : i32
      %87 = tpu.memref_slice %arg1[%86, %c0_i32_46] : memref<31650x64xf32, #tpu.memory_space<any>> -> memref<1x64xf32, #tpu.memory_space<any>>
      %c0_i32_47 = arith.constant 0 : i32
      %88 = tpu.memref_slice %arg6[%84, %c0_i32_47] : memref<128x64xf32, #tpu.memory_space<vmem>> -> memref<1x64xf32, #tpu.memory_space<vmem>>
      tpu.enqueue_dma source(%87 : memref<1x64xf32, #tpu.memory_space<any>>) target(%88 : memref<1x64xf32, #tpu.memory_space<vmem>>) target_semaphore(%arg7 : memref<!tpu.dma_semaphore, #tpu.memory_space<semaphore_mem>>)
      %c15_i32 = arith.constant 15 : i32
      %89 = arith.addi %13, %c15_i32 : i32
      %90 = arith.index_cast %89 : i32 to index
      %91 = memref.load %arg0[%90] : memref<128xi32, #tpu.memory_space<smem>>
      %c0_i32_48 = arith.constant 0 : i32
      %92 = tpu.memref_slice %arg1[%91, %c0_i32_48] : memref<31650x64xf32, #tpu.memory_space<any>> -> memref<1x64xf32, #tpu.memory_space<any>>
      %c0_i32_49 = arith.constant 0 : i32
      %93 = tpu.memref_slice %arg6[%89, %c0_i32_49] : memref<128x64xf32, #tpu.memory_space<vmem>> -> memref<1x64xf32, #tpu.memory_space<vmem>>
      tpu.enqueue_dma source(%92 : memref<1x64xf32, #tpu.memory_space<any>>) target(%93 : memref<1x64xf32, #tpu.memory_space<vmem>>) target_semaphore(%arg7 : memref<!tpu.dma_semaphore, #tpu.memory_space<semaphore_mem>>)
    }
    %c8_i32_0 = arith.constant 8 : i32
    %c0_i32_1 = arith.constant 0 : i32
    %c0_i32_2 = arith.constant 0 : i32
    %1 = tpu.memref_slice %arg1[%c0_i32_1, %c0_i32_2] : memref<31650x64xf32, #tpu.memory_space<any>> -> memref<128x64xf32, #tpu.memory_space<any>>
    tpu.wait_dma2 semaphore(%arg7 : memref<!tpu.dma_semaphore, #tpu.memory_space<semaphore_mem>>) src(%1 : memref<128x64xf32, #tpu.memory_space<any>>) dst(%arg6 : memref<128x64xf32, #tpu.memory_space<vmem>>)
    %c0 = arith.constant 0 : index
    %c0_3 = arith.constant 0 : index
    %2 = vector.load %arg6[%c0, %c0_3] : memref<128x64xf32, #tpu.memory_space<vmem>>, vector<128x64xf32>
    %c0_4 = arith.constant 0 : index
    %c0_5 = arith.constant 0 : index
    %3 = vector.load %arg2[%c0_4, %c0_5] : memref<8x128xf32, #tpu.memory_space<vmem>>, vector<8x128xf32>
    %cst = arith.constant dense<0.000000e+00> : vector<8x64xf32>
    %4 = tpu.matmul %3, %2, %cst {dimension_numbers = #tpu.dot_dimension_numbers<[1], [0], [0], [1], [0, 0, 1, 1], [], []>} : vector<8x128xf32>, vector<128x64xf32>, vector<8x64xf32> -> vector<8x64xf32>
    %c0_6 = arith.constant 0 : index
    %c0_7 = arith.constant 0 : index
    %5 = vector.load %arg3[%c0_6, %c0_7] : memref<64x2xf32, #tpu.memory_space<vmem>>, vector<64x2xf32>
    %cst_8 = arith.constant dense<0.000000e+00> : vector<8x2xf32>
    %6 = tpu.matmul %4, %5, %cst_8 {dimension_numbers = #tpu.dot_dimension_numbers<[1], [0], [0], [1], [0, 0, 1, 1], [], []>} : vector<8x64xf32>, vector<64x2xf32>, vector<8x2xf32> -> vector<8x2xf32>
    %c0_9 = arith.constant 0 : index
    %c0_10 = arith.constant 0 : index
    %7 = vector.load %arg4[%c0_9, %c0_10] : memref<1x2xf32, #tpu.memory_space<vmem>>, vector<1x2xf32>
    %8 = vector.broadcast %7 : vector<1x2xf32> to vector<8x2xf32>
    %9 = arith.addf %6, %8 : vector<8x2xf32>
    %c0_11 = arith.constant 0 : index
    %c0_12 = arith.constant 0 : index
    %10 = vector.load %arg5[%c0_11, %c0_12] : memref<8x2xf32, #tpu.memory_space<vmem>>, vector<8x2xf32>
    tpu.vector_store %arg5[%c0_11, %c0_12], %9 {strides = array<i32>} : memref<8x2xf32, #tpu.memory_space<vmem>>, vector<8x2xf32>,
    return
  }
}

</mosaic_0001>

<bundles_post_ra>
// kernel: text_classification_forward.1
= control target key start
LH: loop header
LB: loop body
LE: loop exit
PB: predicated region body
PF: predicated region fallthrough
CT: control target
= control target key end

     0   :  { %10 = vsyncpa [#allocation5], 0  ;;  %s1617_s0 = inlined_call_operand.vmem [shape: s32[128], index: 0, kind: input, shape index: {}]   ;;  %s1618_s1 = inlined_call_operand.vmem [shape: f32[31650,64], index: 1, kind: input, shape index: {}]   ;;  %s1619_s2 = inlined_call_operand.vmem [shape: f32[8,128], index: 2, kind: input, shape index: {}]   ;;  %s1620_s3 = inlined_call_operand.vmem [shape: f32[64,2], index: 3, kind: input, shape index: {}]   ;;  %s1621_s4 = inlined_call_operand.vmem [shape: f32[1,2], index: 4, kind: input, shape index: {}]   ;;  %s1622_s5 = inlined_call_operand.vmem [shape: f32[8,2], index: 5, kind: output, shape index: {}]  }
   0x1   :  { %s17_s20 = sshll.u32 %s1617_s0, 4  ;;  %s18_s20 = int_to_ptr.vmem [resolvable:$true] %s17_s20 }
   0x2   :  { %s1417_s21 = scalar_lea.vmem %s18_s20, 16  ;;  %p1422_p1 = scmp.lt.s32.totalorder %s18_s20, %s18_s20 }
   0x3   :  { %p1418_p0 = scmp.ne.s32.totalorder %s18_s20, %s1417_s21  ;;  %p1423_p2 = scmp.lt.s32.totalorder %s1417_s21, %s1417_s21 }
   0x5   :  { %p1424_p3 = por %p1423_p2, %p1422_p1 }
   0x7   :  { %p1425_p4 = pnand %p1424_p3, %p1418_p0 }
   0x9   :  { %1428 = shalt.err (!%p1425_p4)
}
   0xa   :  { %s1441_s22 = smov [#allocation4]  }
   0xb   :  { %20 = dma.vmem_to_smem %s18_s20, 16, %s1441_s22, [#allocation5]  }
   0xc   :  { %1433 = dma.done.wait [#allocation5], 16  }
   0xd   :  { %1434 = vsyncadd [#allocation5], 4294967280 }
   0xe   :  { %30 = sfence }
   0xf   :  { %s1478_s23 = smov 0  }
  0x10 LB: > { %s1484_s0 = sshll.u32 %s1439_s23, 4  ;;  %s1439_s23 = sphi %s1478_s23, %s36_s23  }
  0x11   : > { %s38_s24 = sld [smem:[#allocation4 + %s1484_s0]]  ;;  %s1491_s28 = scalar_lea.vmem [#allocation2], %s1484_s0 }
  0x17   : > { %s39_s27 = scalar_lea.vmem %s1618_s1, %s38_s24 }
  0x18   : > { %v58_v0 = vld [vmem:[%s39_s27] sm:$0x1] }
  0x19   : > { %59 = vst [vmem:[%s1491_s28] sm:$0x1] %v58_v0 }
  0x1a   : > { %84 = vsyncadd [#allocation3], 16  ;;  %s85_s29 = sadd.s32 1, %s1484_s0 }
  0x1b   : > { %s86_s30 = sld [smem:[#allocation4 + %s85_s29]] }
  0x21   : > { %s87_s8 = scalar_lea.vmem %s1618_s1, %s86_s30 }
  0x22   : > { %v106_v1 = vld [vmem:[%s87_s8] sm:$0x1] }
  0x23   : > { %1243 = vst [vmem:[%s1491_s28 + $0x1] sm:$0x1] %v106_v1 }
  0x24   : > { %132 = vsyncadd [#allocation3], 16  ;;  %s133_s9 = sadd.s32 2, %s1484_s0 }
  0x25   : > { %s134_s10 = sld [smem:[#allocation4 + %s133_s9]] }
  0x2b   : > { %s135_s13 = scalar_lea.vmem %s1618_s1, %s134_s10 }
  0x2c   : > { %v154_v2 = vld [vmem:[%s135_s13] sm:$0x1] }
  0x2d   : > { %1246 = vst [vmem:[%s1491_s28 + $0x2] sm:$0x1] %v154_v2 }
  0x2e   : > { %180 = vsyncadd [#allocation3], 16  ;;  %s181_s14 = sadd.s32 3, %s1484_s0 }
  0x2f   : > { %s182_s15 = sld [smem:[#allocation4 + %s181_s14]] }
  0x35   : > { %s183_s18 = scalar_lea.vmem %s1618_s1, %s182_s15 }
  0x36   : > { %v202_v3 = vld [vmem:[%s183_s18] sm:$0x1] }
  0x37   : > { %1249 = vst [vmem:[%s1491_s28 + $0x3] sm:$0x1] %v202_v3 }
  0x38   : > { %228 = vsyncadd [#allocation3], 16  ;;  %s229_s19 = sadd.s32 4, %s1484_s0 }
  0x39   : > { %s230_s20 = sld [smem:[#allocation4 + %s229_s19]] }
  0x3f   : > { %s231_s24 = scalar_lea.vmem %s1618_s1, %s230_s20 }
  0x40   : > { %v250_v4 = vld [vmem:[%s231_s24] sm:$0x1] }
  0x41   : > { %1252 = vst [vmem:[%s1491_s28 + $0x4] sm:$0x1] %v250_v4 }
  0x42   : > { %276 = vsyncadd [#allocation3], 16  ;;  %s277_s25 = sadd.s32 5, %s1484_s0 }
  0x43   : > { %s278_s26 = sld [smem:[#allocation4 + %s277_s25]] }
  0x49   : > { %s279_s30 = scalar_lea.vmem %s1618_s1, %s278_s26 }
  0x4a   : > { %v298_v5 = vld [vmem:[%s279_s30] sm:$0x1] }
  0x4b   : > { %1255 = vst [vmem:[%s1491_s28 + $0x5] sm:$0x1] %v298_v5 }
  0x4c   : > { %324 = vsyncadd [#allocation3], 16  ;;  %s325_s6 = sadd.s32 6, %s1484_s0 }
  0x4d   : > { %s326_s7 = sld [smem:[#allocation4 + %s325_s6]] }
  0x53   : > { %s327_s10 = scalar_lea.vmem %s1618_s1, %s326_s7 }
  0x54   : > { %v346_v6 = vld [vmem:[%s327_s10] sm:$0x1] }
  0x55   : > { %1258 = vst [vmem:[%s1491_s28 + $0x6] sm:$0x1] %v346_v6 }
  0x56   : > { %372 = vsyncadd [#allocation3], 16  ;;  %s373_s11 = sadd.s32 7, %s1484_s0 }
  0x57   : > { %s374_s12 = sld [smem:[#allocation4 + %s373_s11]] }
  0x5d   : > { %s375_s15 = scalar_lea.vmem %s1618_s1, %s374_s12 }
  0x5e   : > { %v394_v7 = vld [vmem:[%s375_s15] sm:$0x1] }
  0x5f   : > { %1261 = vst [vmem:[%s1491_s28 + $0x7] sm:$0x1] %v394_v7 }
  0x60   : > { %420 = vsyncadd [#allocation3], 16  ;;  %s421_s16 = sadd.s32 8, %s1484_s0 }
  0x61   : > { %s422_s17 = sld [smem:[#allocation4 + %s421_s16]] }
  0x67   : > { %s423_s20 = scalar_lea.vmem %s1618_s1, %s422_s17 }
  0x68   : > { %v442_v8 = vld [vmem:[%s423_s20] sm:$0x1] }
  0x69   : > { %1264 = vst [vmem:[%s1491_s28 + $0x8] sm:$0x1] %v442_v8 }
  0x6a   : > { %468 = vsyncadd [#allocation3], 16  ;;  %s469_s21 = sadd.s32 9, %s1484_s0 }
  0x6b   : > { %s470_s22 = sld [smem:[#allocation4 + %s469_s21]] }
  0x71   : > { %s471_s26 = scalar_lea.vmem %s1618_s1, %s470_s22 }
  0x72   : > { %v490_v9 = vld [vmem:[%s471_s26] sm:$0x1] }
  0x73   : > { %1267 = vst [vmem:[%s1491_s28 + $0x9] sm:$0x1] %v490_v9 }
  0x74   : > { %516 = vsyncadd [#allocation3], 16  ;;  %s517_s27 = sadd.s32 10, %s1484_s0 }
  0x75   : > { %s518_s29 = sld [smem:[#allocation4 + %s517_s27]] }
  0x7b   : > { %s519_s7 = scalar_lea.vmem %s1618_s1, %s518_s29 }
  0x7c   : > { %v538_v10 = vld [vmem:[%s519_s7] sm:$0x1] }
  0x7d   : > { %1270 = vst [vmem:[%s1491_s28 + $0xa] sm:$0x1] %v538_v10 }
  0x7e   : > { %564 = vsyncadd [#allocation3], 16  ;;  %s565_s8 = sadd.s32 11, %s1484_s0 }
  0x7f   : > { %s566_s9 = sld [smem:[#allocation4 + %s565_s8]] }
  0x85   : > { %s567_s12 = scalar_lea.vmem %s1618_s1, %s566_s9 }
  0x86   : > { %v586_v11 = vld [vmem:[%s567_s12] sm:$0x1] }
  0x87   : > { %1273 = vst [vmem:[%s1491_s28 + $0xb] sm:$0x1] %v586_v11 }
  0x88   : > { %612 = vsyncadd [#allocation3], 16  ;;  %s613_s13 = sadd.s32 12, %s1484_s0 }
  0x89   : > { %s614_s14 = sld [smem:[#allocation4 + %s613_s13]] }
  0x8f   : > { %s615_s17 = scalar_lea.vmem %s1618_s1, %s614_s14 }
  0x90   : > { %v634_v12 = vld [vmem:[%s615_s17] sm:$0x1] }
  0x91   : > { %1276 = vst [vmem:[%s1491_s28 + $0xc] sm:$0x1] %v634_v12 }
  0x92   : > { %660 = vsyncadd [#allocation3], 16  ;;  %s661_s18 = sadd.s32 13, %s1484_s0 }
  0x93   : > { %s662_s19 = sld [smem:[#allocation4 + %s661_s18]] }
  0x99   : > { %s663_s22 = scalar_lea.vmem %s1618_s1, %s662_s19 }
  0x9a   : > { %v682_v13 = vld [vmem:[%s663_s22] sm:$0x1] }
  0x9b   : > { %1279 = vst [vmem:[%s1491_s28 + $0xd] sm:$0x1] %v682_v13 }
  0x9c   : > { %708 = vsyncadd [#allocation3], 16  ;;  %s709_s24 = sadd.s32 14, %s1484_s0 }
  0x9d   : > { %s710_s25 = sld [smem:[#allocation4 + %s709_s24]] }
  0xa3   : > { %s711_s29 = scalar_lea.vmem %s1618_s1, %s710_s25 }
  0xa4   : > { %v730_v14 = vld [vmem:[%s711_s29] sm:$0x1] }
  0xa5   : > { %1282 = vst [vmem:[%s1491_s28 + $0xe] sm:$0x1] %v730_v14 }
  0xa6   : > { %756 = vsyncadd [#allocation3], 16  ;;  %s757_s30 = sadd.s32 15, %s1484_s0 }
  0xa7   : > { %s758_s6 = sld [smem:[#allocation4 + %s757_s30]] }
  0xad   : > { %s759_s9 = scalar_lea.vmem %s1618_s1, %s758_s6 }
  0xae   : > { %v778_v15 = vld [vmem:[%s759_s9] sm:$0x1] }
  0xaf   : > { %1285 = vst [vmem:[%s1491_s28 + $0xf] sm:$0x1] %v778_v15 }
  0xb0   : > { %804 = vsyncadd [#allocation3], 16  ;;  %s36_s23 = sadd.s32 1, %s1439_s23  }
  0xb1   : > { %p33_p5 = scmp.ge.s32.totalorder %s36_s23, 8  }
  0xb3   :  { %35 = sbr.rel (!%p33_p5) target bundleno = 16 (0x10), region = 719 }
  0xba   :  { %1435 = dma.done.wait [#allocation3], 2048 }
  0xbb   :  { %1436 = vsyncadd [#allocation3], 4294965248  ;;  %v1442_v16 = vmov 0.0|0.0   ;;  %vm1443_vm0 = vmmov 0   ;;  %v1444_v17 = vmov 0.0   ;;  %v808_v18 = vld [vmem:[#allocation2] sm:$0xff] }
  0xbc   :  { %1369 = vmatprep.subr.bf16.mxu0 %v1442_v16  ;;  %1347 = vmatprep.mubr.msk.f32.mxu0 %vm1443_vm0, %v1444_v17  ;;  %v809_v19 = vld [vmem:[#allocation2 + $0x8] sm:$0xff]  ;;  %v810_v20 = vld [vmem:[#allocation2 + $0x10] sm:$0xff]  ;;  %v811_v22 = vld [vmem:[#allocation2 + $0x18] sm:$0xff]  ;;  %vm910_vm1 = vcmask 523264   ;;  %vm984_vm2 = vcmask 15360  }
  0xbd   :  { %1393 = vmatprep.subr.bf16.mxu1 %v1442_v16  ;;  %1366 = vmatprep.mubr.msk.f32.mxu1 %vm1443_vm0, %v1444_v17  ;;  %v1370_v21 = vpack.c.bf16 %v809_v19, %v808_v18  ;;  %v1373_v23 = vpack.c.bf16 %v811_v22, %v810_v20  ;;  %v812_v24 = vld [vmem:[#allocation2 + $0x20] sm:$0xff]  ;;  %v813_v25 = vld [vmem:[#allocation2 + $0x28] sm:$0xff]  ;;  %v897_v28 = vld [vmem:[%s1620_s3 + $0x10] sm:$0xff] }
  0xbe   :  { %v895_v26 = vld [vmem:[%s1620_s3] sm:$0xff]  ;;  %v896_v27 = vld [vmem:[%s1620_s3 + $0x8] sm:$0xff]  ;;  %v898_v29 = vld [vmem:[%s1620_s3 + $0x18] sm:$0xff]  ;;  %v1376_v30 = vpack.c.bf16 %v813_v25, %v812_v24 }
  0xbf   :  { %1371 = vmatpush3.bf16.msra.mxu0 %v1370_v21  ;;  %v1394_v31 = vpack.c.bf16 %v896_v27, %v895_v26  ;;  %v814_v32 = vld [vmem:[#allocation2 + $0x30] sm:$0xff]  ;;  %v815_v33 = vld [vmem:[#allocation2 + $0x38] sm:$0xff]  ;;  %v1397_v34 = vpack.c.bf16 %v898_v29, %v897_v28  ;;  %v899_v35 = vld [vmem:[%s1620_s3 + $0x20] sm:$0xff] }
  0xc0   :  { %1372 = vmatprep.subr.bf16.mxu0 %v1442_v16  ;;  %v900_v36 = vld [vmem:[%s1620_s3 + $0x28] sm:$0xff]  ;;  %v1379_v37 = vpack.c.bf16 %v815_v33, %v814_v32  ;;  %v816_v38 = vld [vmem:[#allocation2 + $0x40] sm:$0xff]  ;;  %v901_v41 = vld [vmem:[%s1620_s3 + $0x30] sm:$0xff] }
  0xc1   :  { %1395 = vmatpush3.bf16.msra.mxu1 %v1394_v31  ;;  %v817_v39 = vld [vmem:[#allocation2 + $0x48] sm:$0xff]  ;;  %v1400_v40 = vpack.c.bf16 %v900_v36, %v899_v35  ;;  %v902_v42 = vld [vmem:[%s1620_s3 + $0x38] sm:$0xff]  ;;  %v818_v44 = vld [vmem:[#allocation2 + $0x50] sm:$0xff] }
  0xc2   :  { %1396 = vmatprep.subr.bf16.mxu1 %v1442_v16  ;;  %v1382_v43 = vpack.c.bf16 %v817_v39, %v816_v38  ;;  %v819_v45 = vld [vmem:[#allocation2 + $0x58] sm:$0xff]  ;;  %v1403_v46 = vpack.c.bf16 %v902_v42, %v901_v41  ;;  %v820_v48 = vld [vmem:[#allocation2 + $0x60] sm:$0xff]  ;;  %v821_v49 = vld [vmem:[#allocation2 + $0x68] sm:$0xff] }
  0xc3   :  { %1374 = vmatpush3.bf16.msra.mxu0 %v1373_v23  ;;  %v1385_v47 = vpack.c.bf16 %v819_v45, %v818_v44  ;;  %v1388_v50 = vpack.c.bf16 %v821_v49, %v820_v48  ;;  %v822_v51 = vld [vmem:[#allocation2 + $0x70] sm:$0xff]  ;;  %v823_v52 = vld [vmem:[#allocation2 + $0x78] sm:$0xff]  ;;  %v824_v54 = vld [vmem:[%s1619_s2] sm:$0xff] }
  0xc4   :  { %1375 = vmatprep.subr.bf16.mxu0 %v1442_v16  ;;  %v1391_v53 = vpack.c.bf16 %v823_v52, %v822_v51  ;;  %v1286_v57 = vld [vmem:[%s1621_s4] ss:$0 sm:$0xff] }
  0xc5   :  { %1398 = vmatpush3.bf16.msra.mxu1 %v1397_v34 }
  0xc6   :  { %1399 = vmatprep.subr.bf16.mxu1 %v1442_v16 }
  0xc7   :  { %1377 = vmatpush3.bf16.msra.mxu0 %v1376_v30 }
  0xc8   :  { %1378 = vmatprep.subr.bf16.mxu0 %v1442_v16 }
  0xc9   :  { %1401 = vmatpush3.bf16.msra.mxu1 %v1400_v40 }
  0xca   :  { %1402 = vmatprep.subr.bf16.mxu1 %v1442_v16 }
  0xcb   :  { %1380 = vmatpush3.bf16.msra.mxu0 %v1379_v37 }
  0xcc   :  { %1381 = vmatprep.subr.bf16.mxu0 %v1442_v16 }
  0xcd   :  { %1404 = vmatpush3.bf16.msra.mxu1 %v1403_v46 }
  0xcf   :  { %1383 = vmatpush3.bf16.msra.mxu0 %v1382_v43 }
  0xd0   :  { %1384 = vmatprep.subr.bf16.mxu0 %v1442_v16 }
  0xd3   :  { %1386 = vmatpush3.bf16.msra.mxu0 %v1385_v47 }
  0xd4   :  { %1387 = vmatprep.subr.bf16.mxu0 %v1442_v16 }
  0xd7   :  { %1389 = vmatpush3.bf16.msra.mxu0 %v1388_v50 }
  0xd8   :  { %1390 = vmatprep.subr.bf16.mxu0 %v1442_v16 }
  0xdb   :  { %1392 = vmatpush3.bf16.msra.mxu0 %v1391_v53 }
  0xde   :  { %1348 = vmatmul.mubr.f32.vlgmr.msra.gmra.mrb[0].mxu0 %v824_v54 }
 0x1b1   :  { %v891_v55 = vpop.f32.mrb[0].mxu0 }
 0x1b2   :  { %v1349_v56 = vpop.f32.mrb[1].mxu0  ;;  %1367 = vmatmul.mubr.msk.f32.vlgmr.msra.gmra.mrb[0].mxu1 %vm910_vm1, %v891_v55 }
 0x285   :  { %v980_v58 = vpop.f32.mrb[0].mxu1 }
 0x286   :  { %v981_v59 = vadd.f32 %v1286_v57, %v980_v58  ;;  %v1368_v60 = vpop.f32.mrb[1].mxu1 }
 0x288   :  { %985 = vst.msk [vmem:[%s1622_s5] sm:$0xff] %vm984_vm2, %v981_v59 }
 0x289   :  { %990 = vsyncpa [#allocation5], 1 }
 0x28a   :  { %991 = vsyncmov [#allocation3] }
 0x28d   :  { %s992_s2 = vpop.sfrf %991 }
 0x28e   :  { %p1288_p6 = scmp.ne.s32.totalorder %s992_s2, 0 }
 0x290   :  { %996 = shalt.err (%p1288_p6)  }

</bundles_post_ra>
